<compile_context>
chip_gen: v5e
topology: v5e:2x2
jax: 0.10.0
libtpu: 0.0.40
codegen_flags: <defaults>
</compile_context>

<pallas_src>
import functools

import jax
import jax.numpy as jnp
from jax import lax
from jax.experimental import pallas as pl
from jax.experimental.pallas import tpu as pltpu


def _critic_kernel(obs_ref, act_ref, w1o_ref, w1a_ref, w2_ref, w3_ref,
                   ind_ref, bcast_ref, vecs_ref, out_ref, *,
                   hidden_dim, ensemble_size, eps, matmul_dtype):
    """One batch tile of the critic forward, ensemble fused along lanes.

    obs_ref  : (TB, obs_dim)      f32  streamed batch tile
    act_ref  : (TB, action_dim)   f32  streamed batch tile
    w1o_ref  : (obs_dim, E*H)     matmul dtype  layer-1 weights (obs rows)
    w1a_ref  : (action_dim, E*H)  matmul dtype  layer-1 weights (action rows)
    w2_ref   : (E*H, E*H)         matmul dtype  layer-2, block-diag over members
    w3_ref   : (E*H, E)           matmul dtype  layer-3 heads stacked
    ind_ref  : (E*H, E)           f32  per-member chunk-sum indicator
    bcast_ref: (2E, 2*E*H)        f32  fused [mean | rstd*gamma] broadcast-back
    vecs_ref : (4, E*H)           f32  rows: b1 | beta | b2 | b3 (zero padded)
    out_ref  : (TB, E)            f32  Q value of every ensemble member
    """
    E = ensemble_size
    EH = E * hidden_dim
    inv_h = 1.0 / float(hidden_dim)
    mdt = matmul_dtype

    b1 = vecs_ref[0:1, :]
    beta = vecs_ref[1:2, :]
    b2 = vecs_ref[2:3, :]
    b3 = vecs_ref[3:4, 0:E]

    # ---- Trunk layer 1: VectorizedLinear over all members at once ----------
    # obs / action streamed separately (no wrapper-side concat pass over HBM).
    h = (jnp.dot(obs_ref[...].astype(mdt), w1o_ref[...],
                 preferred_element_type=jnp.float32)
         + jnp.dot(act_ref[...].astype(mdt), w1a_ref[...],
                   preferred_element_type=jnp.float32)
         + b1)                                                 # (TB, EH) f32

    # ---- Per-member LayerNorm, kept lane-dense ------------------------------
    # Stats via f32 indicator matmuls; var = E[h^2] - mean^2 so the two
    # reductions are independent (shorter MXU dependency chain). Biased
    # variance and eps inside rsqrt match torch.nn.LayerNorm.
    ind = ind_ref[...]
    mean = jnp.dot(h, ind, preferred_element_type=jnp.float32) * inv_h   # (TB,E)
    ex2 = jnp.dot(h * h, ind, preferred_element_type=jnp.float32) * inv_h
    var = ex2 - mean * mean
    rstd = lax.rsqrt(var + eps)
    # One 256-lane broadcast-back matmul: [mean | rstd] -> [mean_full | rstd*gamma]
    stats = jnp.concatenate([mean, rstd], axis=-1)             # (TB, 2E)
    mb = jnp.dot(stats, bcast_ref[...], preferred_element_type=jnp.float32)
    mean_full = mb[:, :EH]
    rstd_gamma = mb[:, EH:]                                    # gamma folded on host
    ht = jnp.tanh((h - mean_full) * rstd_gamma + beta)         # (TB, EH)

    # ---- Q head: VectorizedLinear -> ReLU -> VectorizedLinear ---------------
    h2 = jnp.dot(ht.astype(mdt), w2_ref[...],
                 preferred_element_type=jnp.float32) + b2
    h2 = jnp.maximum(h2, 0.0)
    q = jnp.dot(h2.astype(mdt), w3_ref[...],
                preferred_element_type=jnp.float32) + b3       # (TB, E)

    out_ref[...] = q.astype(out_ref.dtype)


def _prepare_operands(params, obs_dim, action_dim, matmul_dtype):
    """Host-side layout plumbing (tiny, constant-folded / fused by XLA)."""
    w1, b1, gamma, beta, w2, b2, w3, b3 = params
    E, Din, H = w1.shape
    EH = E * H
    f32 = jnp.float32

    # Layer-1 weights laid out (Din, E*H): column e*H+j is w1[e, :, j].
    # Split by input rows into obs / action blocks (inputs streamed separately).
    w1_flat = jnp.transpose(w1, (1, 0, 2)).reshape(Din, EH)
    w1_obs = w1_flat[:obs_dim].astype(matmul_dtype)
    w1_act = w1_flat[obs_dim:].astype(matmul_dtype)

    eye_e = jnp.eye(E, dtype=f32)
    # Block-diagonal layer-2 weights (E*H, E*H).
    w2_bd = jnp.einsum('eij,ef->eifj', w2, eye_e).reshape(EH, EH)
    w2_bd = w2_bd.astype(matmul_dtype)
    # Stacked layer-3 heads (E*H, E): column e holds w3[e, :, 0] in chunk e.
    w3_stack = (w3[:, :, 0][:, :, None] * eye_e[:, None, :]).reshape(EH, E)
    w3_stack = w3_stack.astype(matmul_dtype)

    # LayerNorm helpers (f32): chunk-sum indicator, and a fused broadcast-back
    # matrix [mean | rstd] (TB,2E) @ bcast (2E, 2*EH) -> [mean_full | rstd*gamma]
    # with gamma folded into the rstd half.
    ind = jnp.repeat(eye_e, H, axis=0)                         # (EH, E)
    indt = ind.T                                               # (E, EH)
    gamma_row = jnp.tile(gamma.astype(f32), E)                 # (EH,)
    zeros = jnp.zeros((E, EH), f32)
    bcast = jnp.concatenate([
        jnp.concatenate([indt, zeros], axis=1),                        # mean half
        jnp.concatenate([zeros, indt * gamma_row[None, :]], axis=1),   # rstd*gamma
    ], axis=0)                                                 # (2E, 2*EH)

    # Pack the tiny row-vector operands into one block (fewer DMA descriptors).
    b1_row = b1[:, 0, :].reshape(EH).astype(f32)
    beta_row = jnp.tile(beta.astype(f32), E)
    b2_row = b2[:, 0, :].reshape(EH).astype(f32)
    b3_row = jnp.zeros((EH,), f32).at[:E].set(b3[:, 0, 0])
    vecs = jnp.stack([b1_row, beta_row, b2_row, b3_row], axis=0)   # (4, EH)

    return w1_obs, w1_act, w2_bd, w3_stack, ind, bcast, vecs


def _pick_batch_tile(B, batch_tile):
    """Multiple-of-8 batch tile; prefer >= 2 grid steps so v7x's two
    TensorCores both get work on the 'parallel' batch axis."""
    if B <= 8:
        return B
    tb = min(batch_tile, B)
    if B >= 16 and B <= tb:
        tb = (B + 1) // 2
    return max(8, (tb // 8) * 8)


def vectorized_critic(obs, action, params, *, batch_tile=1024,
                      matmul_dtype=jnp.bfloat16):
    """obs: (B, obs_dim), action: (B, action_dim) -> Qs: (E, B, 1)."""
    obs = obs.astype(jnp.float32)
    action = action.astype(jnp.float32)
    B, obs_dim = obs.shape
    _, action_dim = action.shape
    w1 = params[0]
    E, Din, H = w1.shape
    assert Din == obs_dim + action_dim
    EH = E * H
    eps = 1e-5

    (w1_obs, w1_act, w2_bd, w3_stack, ind, bcast, vecs) = _prepare_operands(
        params, obs_dim, action_dim, matmul_dtype)

    TB = _pick_batch_tile(B, batch_tile)
    grid = (pl.cdiv(B, TB),)

    kernel = functools.partial(_critic_kernel, hidden_dim=H, ensemble_size=E,
                               eps=eps, matmul_dtype=matmul_dtype)

    q_be = pl.pallas_call(
        kernel,
        out_shape=jax.ShapeDtypeStruct((B, E), jnp.float32),
        grid_spec=pltpu.PrefetchScalarGridSpec(
            num_scalar_prefetch=0,
            grid=grid,
            in_specs=[
                pl.BlockSpec((TB, obs_dim), lambda i: (i, 0)),      # obs stream
                pl.BlockSpec((TB, action_dim), lambda i: (i, 0)),   # action stream
                pl.BlockSpec((obs_dim, EH), lambda i: (0, 0)),      # w1 (obs rows)
                pl.BlockSpec((action_dim, EH), lambda i: (0, 0)),   # w1 (act rows)
                pl.BlockSpec((EH, EH), lambda i: (0, 0)),           # w2 block-diag
                pl.BlockSpec((EH, E), lambda i: (0, 0)),            # w3 stacked
                pl.BlockSpec((EH, E), lambda i: (0, 0)),            # LN indicator
                pl.BlockSpec((2 * E, 2 * EH), lambda i: (0, 0)),    # LN broadcast
                pl.BlockSpec((4, EH), lambda i: (0, 0)),            # packed biases
            ],
            out_specs=pl.BlockSpec((TB, E), lambda i: (i, 0)),
        ),
        compiler_params=pltpu.CompilerParams(
            dimension_semantics=("parallel",),
            # Explicit VMEM budget: ~10 f32 (TB, 128) intermediates at TB=2048
            # is ~10 MiB; 32 MiB leaves headroom and is well under v7x's
            # 64 MiB physical VMEM.
            vmem_limit_bytes=32 * 1024 * 1024),
    )(obs, action, w1_obs, w1_act, w2_bd, w3_stack, ind, bcast, vecs)

    # Back to the PyTorch output layout (E, B, 1) -- free wrapper plumbing.
    return jnp.transpose(q_be, (1, 0))[:, :, None]


def init_params(key, in_dim, hidden_dim, ensemble_size):
    """Deterministic synthetic init mirroring the module __init__:
    weights ~ N(0, 0.33), biases = 0, LayerNorm gamma=1 beta=0."""
    k1, k2, k3 = jax.random.split(key, 3)
    w1 = 0.33 * jax.random.normal(k1, (ensemble_size, in_dim, hidden_dim), jnp.float32)
    b1 = jnp.zeros((ensemble_size, 1, hidden_dim), jnp.float32)
    gamma = jnp.ones((hidden_dim,), jnp.float32)
    beta = jnp.zeros((hidden_dim,), jnp.float32)
    w2 = 0.33 * jax.random.normal(k2, (ensemble_size, hidden_dim, hidden_dim), jnp.float32)
    b2 = jnp.zeros((ensemble_size, 1, hidden_dim), jnp.float32)
    w3 = 0.33 * jax.random.normal(k3, (ensemble_size, hidden_dim, 1), jnp.float32)
    b3 = jnp.zeros((ensemble_size, 1, 1), jnp.float32)
    return (w1, b1, gamma, beta, w2, b2, w3, b3)


def reference(obs, action, params, matmul_dtype=jnp.float32):
    """Pure-JAX reference matching the PyTorch forward.  With a non-f32
    matmul_dtype it quantizes matmul operands exactly like the kernel while
    keeping LayerNorm and accumulation in f32."""
    w1, b1, gamma, beta, w2, b2, w3, b3 = params
    c = lambda a: a.astype(matmul_dtype)
    x = jnp.concatenate([obs, action], axis=-1)                # (B, Din)
    h = jnp.einsum('bd,edh->ebh', c(x), c(w1),
                   preferred_element_type=jnp.float32) + b1    # broadcast like torch @
    mean = jnp.mean(h, axis=-1, keepdims=True)
    var = jnp.mean((h - mean) ** 2, axis=-1, keepdims=True)
    h = (h - mean) / jnp.sqrt(var + 1e-5) * gamma + beta
    h = jnp.tanh(h)
    h2 = jnp.maximum(jnp.einsum('ebh,ehk->ebk', c(h), c(w2),
                                preferred_element_type=jnp.float32) + b2, 0.0)
    q = jnp.einsum('ebh,ehk->ebk', c(h2), c(w3),
                   preferred_element_type=jnp.float32) + b3
    return q


if __name__ == "__main__":
    # Small shapes consistent with the module's forward.
    B = 8
    obs_dim = 24
    action_dim = 8
    hidden_dim = 32
    ensemble_size = 4          # E * H = 128 -> exactly one vreg/MXU lane tile

    key = jax.random.PRNGKey(0)
    k_obs, k_act, k_par, k_obs2, k_act2 = jax.random.split(key, 5)
    obs = jax.random.normal(k_obs, (B, obs_dim), jnp.float32)
    action = jax.random.normal(k_act, (B, action_dim), jnp.float32)
    params = init_params(k_par, obs_dim + action_dim, hidden_dim, ensemble_size)

    # 1) f32 matmul path: strict parity with the torch-equivalent reference.
    q_f32 = vectorized_critic(obs, action, params, matmul_dtype=jnp.float32)
    q_f32 = jax.block_until_ready(q_f32)
    ref_f32 = reference(obs, action, params, jnp.float32)
    assert q_f32.shape == (ensemble_size, B, 1)
    assert jnp.allclose(q_f32, ref_f32, atol=1e-4, rtol=1e-4)

    # 2) bf16 matmul path (default): checked against a bf16-matched reference
    #    (LayerNorm stats stay f32 in both), loose tolerance absorbs
    #    quantization rounding-boundary flips.
    q_bf16 = vectorized_critic(obs, action, params)
    q_bf16 = jax.block_until_ready(q_bf16)
    ref_bf16 = reference(obs, action, params, jnp.bfloat16)
    assert jnp.allclose(q_bf16, ref_bf16, atol=2e-2, rtol=2e-2)

    # 3) Ragged batch (B not a multiple of the tile): partial last block must
    #    be masked correctly on the output write.
    B2 = 22
    obs2 = jax.random.normal(k_obs2, (B2, obs_dim), jnp.float32)
    act2 = jax.random.normal(k_act2, (B2, action_dim), jnp.float32)
    q2 = vectorized_critic(obs2, act2, params, matmul_dtype=jnp.float32)
    q2 = jax.block_until_ready(q2)
    ref2 = reference(obs2, act2, params, jnp.float32)
    assert q2.shape == (ensemble_size, B2, 1)
    assert jnp.allclose(q2, ref2, atol=1e-4, rtol=1e-4)

    print("KERNEL_OK")
</pallas_src>

<mosaic_0001>
module attributes {stable_mosaic.version = 11 : i64} {
  func.func @_critic_kernel(%arg0: i32, %arg1: memref<8x24xf32, #tpu.memory_space<vmem>>, %arg2: memref<8x8xf32, #tpu.memory_space<vmem>>, %arg3: memref<24x128xf32, #tpu.memory_space<vmem>>, %arg4: memref<8x128xf32, #tpu.memory_space<vmem>>, %arg5: memref<128x128xf32, #tpu.memory_space<vmem>>, %arg6: memref<128x4xf32, #tpu.memory_space<vmem>>, %arg7: memref<128x4xf32, #tpu.memory_space<vmem>>, %arg8: memref<8x256xf32, #tpu.memory_space<vmem>>, %arg9: memref<4x128xf32, #tpu.memory_space<vmem>>, %arg10: memref<8x4xf32, #tpu.memory_space<vmem>>) attributes {dimension_semantics = [#tpu.dimension_semantics<parallel>], iteration_bounds = array<i64: 1>, scalar_prefetch = 0 : i64, scratch_operands = 0 : i64, tpu.core_type = #tpu.core_type<tc>, window_params = [{transform_indices = @transform_0, window_bounds = array<i64: 8, 24>}, {transform_indices = @transform_1, window_bounds = array<i64: 8, 8>}, {pipeline_mode = #tpu.pipeline_mode<synchronous>, transform_indices = @transform_2, window_bounds = array<i64: 24, 128>}, {pipeline_mode = #tpu.pipeline_mode<synchronous>, transform_indices = @transform_3, window_bounds = array<i64: 8, 128>}, {pipeline_mode = #tpu.pipeline_mode<synchronous>, transform_indices = @transform_4, window_bounds = array<i64: 128, 128>}, {pipeline_mode = #tpu.pipeline_mode<synchronous>, transform_indices = @transform_5, window_bounds = array<i64: 128, 4>}, {pipeline_mode = #tpu.pipeline_mode<synchronous>, transform_indices = @transform_6, window_bounds = array<i64: 128, 4>}, {pipeline_mode = #tpu.pipeline_mode<synchronous>, transform_indices = @transform_7, window_bounds = array<i64: 8, 256>}, {pipeline_mode = #tpu.pipeline_mode<synchronous>, transform_indices = @transform_8, window_bounds = array<i64: 4, 128>}, {transform_indices = @transform_9, window_bounds = array<i64: 8, 4>}]} {
    %c0 = arith.constant 0 : index
    %c0_0 = arith.constant 0 : index
    %0 = vector.load %arg9[%c0, %c0_0] : memref<4x128xf32, #tpu.memory_space<vmem>>, vector<1x128xf32>
    %c1 = arith.constant 1 : index
    %c0_1 = arith.constant 0 : index
    %1 = vector.load %arg9[%c1, %c0_1] : memref<4x128xf32, #tpu.memory_space<vmem>>, vector<1x128xf32>
    %c2 = arith.constant 2 : index
    %c0_2 = arith.constant 0 : index
    %2 = vector.load %arg9[%c2, %c0_2] : memref<4x128xf32, #tpu.memory_space<vmem>>, vector<1x128xf32>
    %c3 = arith.constant 3 : index
    %c0_3 = arith.constant 0 : index
    %3 = vector.load %arg9[%c3, %c0_3] : memref<4x128xf32, #tpu.memory_space<vmem>>, vector<1x4xf32>
    %c0_4 = arith.constant 0 : index
    %c0_5 = arith.constant 0 : index
    %4 = vector.load %arg1[%c0_4, %c0_5] : memref<8x24xf32, #tpu.memory_space<vmem>>, vector<8x24xf32>
    %c0_6 = arith.constant 0 : index
    %c0_7 = arith.constant 0 : index
    %5 = vector.load %arg3[%c0_6, %c0_7] : memref<24x128xf32, #tpu.memory_space<vmem>>, vector<24x128xf32>
    %cst = arith.constant dense<0.000000e+00> : vector<8x128xf32>
    %6 = tpu.matmul %4, %5, %cst {dimension_numbers = #tpu.dot_dimension_numbers<[1], [0], [0], [1], [0, 0, 1, 1], [], []>} : vector<8x24xf32>, vector<24x128xf32>, vector<8x128xf32> -> vector<8x128xf32>
    %c0_8 = arith.constant 0 : index
    %c0_9 = arith.constant 0 : index
    %7 = vector.load %arg2[%c0_8, %c0_9] : memref<8x8xf32, #tpu.memory_space<vmem>>, vector<8x8xf32>
    %c0_10 = arith.constant 0 : index
    %c0_11 = arith.constant 0 : index
    %8 = vector.load %arg4[%c0_10, %c0_11] : memref<8x128xf32, #tpu.memory_space<vmem>>, vector<8x128xf32>
    %cst_12 = arith.constant dense<0.000000e+00> : vector<8x128xf32>
    %9 = tpu.matmul %7, %8, %cst_12 {dimension_numbers = #tpu.dot_dimension_numbers<[1], [0], [0], [1], [0, 0, 1, 1], [], []>} : vector<8x8xf32>, vector<8x128xf32>, vector<8x128xf32> -> vector<8x128xf32>
    %10 = arith.addf %6, %9 : vector<8x128xf32>
    %11 = vector.broadcast %0 : vector<1x128xf32> to vector<8x128xf32>
    %12 = arith.addf %10, %11 : vector<8x128xf32>
    %c0_13 = arith.constant 0 : index
    %c0_14 = arith.constant 0 : index
    %13 = vector.load %arg7[%c0_13, %c0_14] : memref<128x4xf32, #tpu.memory_space<vmem>>, vector<128x4xf32>
    %cst_15 = arith.constant dense<0.000000e+00> : vector<8x4xf32>
    %14 = tpu.matmul %12, %13, %cst_15 {dimension_numbers = #tpu.dot_dimension_numbers<[1], [0], [0], [1], [0, 0, 1, 1], [], []>} : vector<8x128xf32>, vector<128x4xf32>, vector<8x4xf32> -> vector<8x4xf32>
    %cst_16 = arith.constant 3.125000e-02 : f32
    %15 = vector.broadcast %cst_16 : f32 to vector<8x4xf32>
    %16 = arith.mulf %14, %15 : vector<8x4xf32>
    %17 = arith.mulf %12, %12 : vector<8x128xf32>
    %cst_17 = arith.constant dense<0.000000e+00> : vector<8x4xf32>
    %18 = tpu.matmul %17, %13, %cst_17 {dimension_numbers = #tpu.dot_dimension_numbers<[1], [0], [0], [1], [0, 0, 1, 1], [], []>} : vector<8x128xf32>, vector<128x4xf32>, vector<8x4xf32> -> vector<8x4xf32>
    %cst_18 = arith.constant 3.125000e-02 : f32
    %19 = vector.broadcast %cst_18 : f32 to vector<8x4xf32>
    %20 = arith.mulf %18, %19 : vector<8x4xf32>
    %21 = arith.mulf %16, %16 : vector<8x4xf32>
    %22 = arith.subf %20, %21 : vector<8x4xf32>
    %cst_19 = arith.constant 9.99999974E-6 : f32
    %23 = vector.broadcast %cst_19 : f32 to vector<8x4xf32>
    %24 = arith.addf %22, %23 : vector<8x4xf32>
    %25 = math.rsqrt %24 : vector<8x4xf32>
    %26 = tpu.concatenate %16, %25 in 1 : vector<8x4xf32>, vector<8x4xf32> -> vector<8x8xf32>
    %c0_20 = arith.constant 0 : index
    %c0_21 = arith.constant 0 : index
    %27 = vector.load %arg8[%c0_20, %c0_21] : memref<8x256xf32, #tpu.memory_space<vmem>>, vector<8x256xf32>
    %cst_22 = arith.constant dense<0.000000e+00> : vector<8x256xf32>
    %28 = tpu.matmul %26, %27, %cst_22 {dimension_numbers = #tpu.dot_dimension_numbers<[1], [0], [0], [1], [0, 0, 1, 1], [], []>} : vector<8x8xf32>, vector<8x256xf32>, vector<8x256xf32> -> vector<8x256xf32>
    %29 = vector.extract_strided_slice %28 {offsets = [0, 0], sizes = [8, 128], strides = [1, 1]} : vector<8x256xf32> to vector<8x128xf32>
    %30 = vector.extract_strided_slice %28 {offsets = [0, 128], sizes = [8, 128], strides = [1, 1]} : vector<8x256xf32> to vector<8x128xf32>
    %31 = arith.subf %12, %29 : vector<8x128xf32>
    %32 = arith.mulf %31, %30 : vector<8x128xf32>
    %33 = vector.broadcast %1 : vector<1x128xf32> to vector<8x128xf32>
    %34 = arith.addf %32, %33 : vector<8x128xf32>
    %35 = math.tanh %34 : vector<8x128xf32>
    %c0_23 = arith.constant 0 : index
    %c0_24 = arith.constant 0 : index
    %36 = vector.load %arg5[%c0_23, %c0_24] : memref<128x128xf32, #tpu.memory_space<vmem>>, vector<128x128xf32>
    %cst_25 = arith.constant dense<0.000000e+00> : vector<8x128xf32>
    %37 = tpu.matmul %35, %36, %cst_25 {dimension_numbers = #tpu.dot_dimension_numbers<[1], [0], [0], [1], [0, 0, 1, 1], [], []>} : vector<8x128xf32>, vector<128x128xf32>, vector<8x128xf32> -> vector<8x128xf32>
    %38 = vector.broadcast %2 : vector<1x128xf32> to vector<8x128xf32>
    %39 = arith.addf %37, %38 : vector<8x128xf32>
    %cst_26 = arith.constant 0.000000e+00 : f32
    %40 = vector.broadcast %cst_26 : f32 to vector<8x128xf32>
    %41 = arith.maximumf %39, %40 : vector<8x128xf32>
    %c0_27 = arith.constant 0 : index
    %c0_28 = arith.constant 0 : index
    %42 = vector.load %arg6[%c0_27, %c0_28] : memref<128x4xf32, #tpu.memory_space<vmem>>, vector<128x4xf32>
    %cst_29 = arith.constant dense<0.000000e+00> : vector<8x4xf32>
    %43 = tpu.matmul %41, %42, %cst_29 {dimension_numbers = #tpu.dot_dimension_numbers<[1], [0], [0], [1], [0, 0, 1, 1], [], []>} : vector<8x128xf32>, vector<128x4xf32>, vector<8x4xf32> -> vector<8x4xf32>
    %44 = vector.broadcast %3 : vector<1x4xf32> to vector<8x4xf32>
    %45 = arith.addf %43, %44 : vector<8x4xf32>
    %c0_30 = arith.constant 0 : index
    %c0_31 = arith.constant 0 : index
    %46 = vector.load %arg10[%c0_30, %c0_31] : memref<8x4xf32, #tpu.memory_space<vmem>>, vector<8x4xf32>
    tpu.vector_store %arg10[%c0_30, %c0_31], %45 {strides = array<i32>} : memref<8x4xf32, #tpu.memory_space<vmem>>, vector<8x4xf32>,
    return
  }
  func.func @transform_0(%arg0: i32) -> (i32, i32) {
    %c0_i32 = arith.constant 0 : i32
    %c0_i32_0 = arith.constant 0 : i32
    return %arg0, %c0_i32 : i32, i32
  }
  func.func @transform_1(%arg0: i32) -> (i32, i32) {
    %c0_i32 = arith.constant 0 : i32
    %c0_i32_0 = arith.constant 0 : i32
    return %arg0, %c0_i32 : i32, i32
  }
  func.func @transform_2(%arg0: i32) -> (i32, i32) {
    %c0_i32 = arith.constant 0 : i32
    %c0_i32_0 = arith.constant 0 : i32
    %c0_i32_1 = arith.constant 0 : i32
    return %c0_i32, %c0_i32_0 : i32, i32
  }
  func.func @transform_3(%arg0: i32) -> (i32, i32) {
    %c0_i32 = arith.constant 0 : i32
    %c0_i32_0 = arith.constant 0 : i32
    %c0_i32_1 = arith.constant 0 : i32
    return %c0_i32, %c0_i32_0 : i32, i32
  }
  func.func @transform_4(%arg0: i32) -> (i32, i32) {
    %c0_i32 = arith.constant 0 : i32
    %c0_i32_0 = arith.constant 0 : i32
    %c0_i32_1 = arith.constant 0 : i32
    return %c0_i32, %c0_i32_0 : i32, i32
  }
  func.func @transform_5(%arg0: i32) -> (i32, i32) {
    %c0_i32 = arith.constant 0 : i32
    %c0_i32_0 = arith.constant 0 : i32
    %c0_i32_1 = arith.constant 0 : i32
    return %c0_i32, %c0_i32_0 : i32, i32
  }
  func.func @transform_6(%arg0: i32) -> (i32, i32) {
    %c0_i32 = arith.constant 0 : i32
    %c0_i32_0 = arith.constant 0 : i32
    %c0_i32_1 = arith.constant 0 : i32
    return %c0_i32, %c0_i32_0 : i32, i32
  }
  func.func @transform_7(%arg0: i32) -> (i32, i32) {
    %c0_i32 = arith.constant 0 : i32
    %c0_i32_0 = arith.constant 0 : i32
    %c0_i32_1 = arith.constant 0 : i32
    return %c0_i32, %c0_i32_0 : i32, i32
  }
  func.func @transform_8(%arg0: i32) -> (i32, i32) {
    %c0_i32 = arith.constant 0 : i32
    %c0_i32_0 = arith.constant 0 : i32
    %c0_i32_1 = arith.constant 0 : i32
    return %c0_i32, %c0_i32_0 : i32, i32
  }
  func.func @transform_9(%arg0: i32) -> (i32, i32) {
    %c0_i32 = arith.constant 0 : i32
    %c0_i32_0 = arith.constant 0 : i32
    return %arg0, %c0_i32 : i32, i32
  }
}

</mosaic_0001>

<bundles_post_ra>
// kernel: tpu_custom_call.1
= control target key start
LH: loop header
LB: loop body
LE: loop exit
PB: predicated region body
PF: predicated region fallthrough
CT: control target
= control target key end

     0   :  { %vm42_vm0 = vcmask 64512   ;;  %vm66_vm1 = vcmask 195584   ;;  %vm168_vm5 = vcmask 31744   ;;  %s558_s2 = inlined_call_operand.vmem [shape: f32[24,128], index: 2, kind: input, shape index: {}]   ;;  %s559_s3 = inlined_call_operand.vmem [shape: f32[8,128], index: 3, kind: input, shape index: {}]   ;;  %s560_s1 = inlined_call_operand.vmem [shape: f32[8,8], index: 1, kind: input, shape index: {}]   ;;  %s561_s6 = inlined_call_operand.vmem [shape: f32[128,4], index: 6, kind: input, shape index: {}]   ;;  %s562_s0 = inlined_call_operand.vmem [shape: f32[8,24], index: 0, kind: input, shape index: {}]   ;;  %s563_s8 = inlined_call_operand.vmem [shape: f32[4,128], index: 8, kind: input, shape index: {}]   ;;  %s564_s7 = inlined_call_operand.vmem [shape: f32[8,256], index: 7, kind: input, shape index: {}]   ;;  %s565_s4 = inlined_call_operand.vmem [shape: f32[128,128], index: 4, kind: input, shape index: {}]   ;;  %s566_s5 = inlined_call_operand.vmem [shape: f32[128,4], index: 5, kind: input, shape index: {}]   ;;  %s567_s9 = inlined_call_operand.vmem [shape: f32[8,4], index: 9, kind: output, shape index: {}]  }
   0x1   :  { %v39_v0 = vld [vmem:[%s558_s2 + $0x10] sm:$0xff]  ;;  %v38_v1 = vld [vmem:[%s558_s2 + $0x8] sm:$0xff]  ;;  %v41_v2 = vld [vmem:[%s559_s3] sm:$0xff] }
   0x2   :  { %83 = vmatpush.msra.mxu2 %v39_v0  ;;  %61 = vmatpush.msra.mxu3 %v41_v2  ;;  %v40_v3 = vld [vmem:[%s560_s1] sm:$0xff]  ;;  %v107_v5 = vld [vmem:[%s561_s6 + $0x78] sm:$0xff]  ;;  %v106_v7 = vld [vmem:[%s561_s6 + $0x70] sm:$0xff] }
   0x3   :  { %v37_v4 = vld [vmem:[%s558_s2] sm:$0xff]  ;;  %300 = vmatmul.msk.f32.vlgmr.msra.gmra.mxu3 %vm42_vm0, %v40_v3  ;;  %v105_v8 = vld [vmem:[%s561_s6 + $0x68] sm:$0xff]  ;;  %v103_v10 = vld [vmem:[%s561_s6 + $0x58] sm:$0xff] }
   0x4   :  { %84 = vmatpush.msra.mxu2 %v38_v1  ;;  %v36_v6 = vld [vmem:[%s562_s0] sm:$0xff]  ;;  %130 = vmatpush.msrb.mxu3 %v107_v5  ;;  %v102_v11 = vld [vmem:[%s561_s6 + $0x50] sm:$0xff]  ;;  %v101_v12 = vld [vmem:[%s561_s6 + $0x48] sm:$0xff] }
   0x5   :  { %v104_v9 = vld [vmem:[%s561_s6 + $0x60] sm:$0xff]  ;;  %v99_v14 = vld [vmem:[%s561_s6 + $0x38] sm:$0xff]  ;;  %v98_v15 = vld [vmem:[%s561_s6 + $0x30] sm:$0xff] }
   0x6   :  { %85 = vmatpush.msra.mxu2 %v37_v4  ;;  %131 = vmatpush.msrb.mxu3 %v106_v7  ;;  %v100_v13 = vld [vmem:[%s561_s6 + $0x40] sm:$0xff]  ;;  %v97_v16 = vld [vmem:[%s561_s6 + $0x28] sm:$0xff]  ;;  %v95_v18 = vld [vmem:[%s561_s6 + $0x18] sm:$0xff] }
   0x7   :  { %301 = vmatmul.msk.f32.vlgmr.msra.gmra.mxu2 %vm66_vm1, %v36_v6  ;;  %v96_v17 = vld [vmem:[%s561_s6 + $0x20] sm:$0xff]  ;;  %v94_v19 = vld [vmem:[%s561_s6 + $0x10] sm:$0xff]  ;;  %v93_v20 = vld [vmem:[%s561_s6 + $0x8] sm:$0xff] }
   0x8   :  { %108 = vmatpush.msrb.mxu2 %v107_v5  ;;  %132 = vmatpush.msrb.mxu3 %v105_v8  ;;  %v92_v21 = vld [vmem:[%s561_s6] sm:$0xff]  ;;  %s313_s6 = smov 4   ;;  %v171_v43 = vld [vmem:[%s564_s7 + $0x8] sm:$0xff]  ;;  %v235_v44 = vld [vmem:[%s565_s4 + $0x78] sm:$0xff] }
   0x9   :  { %v305_v23 = vld [vmem:[%s563_s8] ss:$0 sm:$0xff]  ;;  %210 = vmatpush.msra.mxu1 %v171_v43  ;;  %v234_v45 = vld [vmem:[%s565_s4 + $0x70] sm:$0xff]  ;;  %v233_v46 = vld [vmem:[%s565_s4 + $0x68] sm:$0xff] }
   0xa   :  { %109 = vmatpush.msrb.mxu2 %v106_v7  ;;  %133 = vmatpush.msrb.mxu3 %v104_v9  ;;  %v170_v42 = vld [vmem:[%s564_s7] sm:$0xff]  ;;  %v231_v48 = vld [vmem:[%s565_s4 + $0x58] sm:$0xff]  ;;  %v230_v49 = vld [vmem:[%s565_s4 + $0x50] sm:$0xff] }
   0xb   :  { %190 = vmatpush.msra.mxu0 %v170_v42  ;;  %v232_v47 = vld [vmem:[%s565_s4 + $0x60] sm:$0xff]  ;;  %v229_v50 = vld [vmem:[%s565_s4 + $0x48] sm:$0xff]  ;;  %v227_v52 = vld [vmem:[%s565_s4 + $0x38] sm:$0xff] }
   0xc   :  { %110 = vmatpush.msrb.mxu2 %v105_v8  ;;  %134 = vmatpush.msrb.mxu3 %v103_v10  ;;  %v228_v51 = vld [vmem:[%s565_s4 + $0x40] sm:$0xff]  ;;  %v226_v55 = vld [vmem:[%s565_s4 + $0x30] sm:$0xff]  ;;  %v225_v56 = vld [vmem:[%s565_s4 + $0x28] sm:$0xff] }
   0xd   :  { %237 = vmatpush.msrb.mxu0 %v235_v44  ;;  %v224_v57 = vld [vmem:[%s565_s4 + $0x20] sm:$0xff]  ;;  %v223_v58 = vld [vmem:[%s565_s4 + $0x18] sm:$0xff]  ;;  %v222_v59 = vld [vmem:[%s565_s4 + $0x10] sm:$0xff] }
   0xe   :  { %111 = vmatpush.msrb.mxu2 %v104_v9  ;;  %135 = vmatpush.msrb.mxu3 %v102_v11  ;;  %v221_v60 = vld [vmem:[%s565_s4 + $0x8] sm:$0xff]  ;;  %v220_v61 = vld [vmem:[%s565_s4] sm:$0xff]  ;;  %v273_v62 = vld [vmem:[%s566_s5 + $0x78] sm:$0xff] }
   0xf   :  { %238 = vmatpush.msrb.mxu0 %v234_v45  ;;  %v272_v63 = vld [vmem:[%s566_s5 + $0x70] sm:$0xff]  ;;  %275 = vmatpush.msrb.mxu1 %v273_v62  ;;  %v271_v0 = vld [vmem:[%s566_s5 + $0x68] sm:$0xff]  ;;  %v270_v1 = vld [vmem:[%s566_s5 + $0x60] sm:$0xff] }
  0x10   :  { %112 = vmatpush.msrb.mxu2 %v103_v10  ;;  %136 = vmatpush.msrb.mxu3 %v101_v12  ;;  %v269_v2 = vld [vmem:[%s566_s5 + $0x58] sm:$0xff]  ;;  %v268_v3 = vld [vmem:[%s566_s5 + $0x50] sm:$0xff]  ;;  %v267_v4 = vld [vmem:[%s566_s5 + $0x48] sm:$0xff] }
  0x11   :  { %239 = vmatpush.msrb.mxu0 %v233_v46  ;;  %276 = vmatpush.msrb.mxu1 %v272_v63  ;;  %v266_v5 = vld [vmem:[%s566_s5 + $0x40] sm:$0xff]  ;;  %v265_v6 = vld [vmem:[%s566_s5 + $0x38] sm:$0xff]  ;;  %v264_v7 = vld [vmem:[%s566_s5 + $0x30] sm:$0xff] }
  0x12   :  { %113 = vmatpush.msrb.mxu2 %v102_v11  ;;  %137 = vmatpush.msrb.mxu3 %v100_v13  ;;  %v263_v9 = vld [vmem:[%s566_s5 + $0x28] sm:$0xff]  ;;  %v306_v11 = vld [vmem:[%s563_s8 + $0x1] ss:$0 sm:$0xff] }
  0x13   :  { %240 = vmatpush.msrb.mxu0 %v232_v47  ;;  %277 = vmatpush.msrb.mxu1 %v271_v0 }
  0x14   :  { %114 = vmatpush.msrb.mxu2 %v101_v12  ;;  %138 = vmatpush.msrb.mxu3 %v99_v14 }
  0x15   :  { %241 = vmatpush.msrb.mxu0 %v231_v48  ;;  %278 = vmatpush.msrb.mxu1 %v270_v1 }
  0x16   :  { %115 = vmatpush.msrb.mxu2 %v100_v13  ;;  %139 = vmatpush.msrb.mxu3 %v98_v15  ;;  %v262_v13 = vld [vmem:[%s566_s5 + $0x20] sm:$0xff] }
  0x17   :  { %242 = vmatpush.msrb.mxu0 %v230_v49  ;;  %279 = vmatpush.msrb.mxu1 %v269_v2 }
  0x18   :  { %116 = vmatpush.msrb.mxu2 %v99_v14  ;;  %140 = vmatpush.msrb.mxu3 %v97_v16 }
  0x19   :  { %243 = vmatpush.msrb.mxu0 %v229_v50  ;;  %280 = vmatpush.msrb.mxu1 %v268_v3 }
  0x1a   :  { %117 = vmatpush.msrb.mxu2 %v98_v15  ;;  %141 = vmatpush.msrb.mxu3 %v96_v17  ;;  %v261_v15 = vld [vmem:[%s566_s5 + $0x18] sm:$0xff] }
  0x1b   :  { %244 = vmatpush.msrb.mxu0 %v228_v51  ;;  %281 = vmatpush.msrb.mxu1 %v267_v4 }
  0x1c   :  { %118 = vmatpush.msrb.mxu2 %v97_v16  ;;  %142 = vmatpush.msrb.mxu3 %v95_v18 }
  0x1d   :  { %245 = vmatpush.msrb.mxu0 %v227_v52  ;;  %282 = vmatpush.msrb.mxu1 %v266_v5 }
  0x1e   :  { %119 = vmatpush.msrb.mxu2 %v96_v17  ;;  %143 = vmatpush.msrb.mxu3 %v94_v19 }
  0x1f   :  { %246 = vmatpush.msrb.mxu0 %v226_v55  ;;  %283 = vmatpush.msrb.mxu1 %v265_v6 }
  0x20   :  { %120 = vmatpush.msrb.mxu2 %v95_v18  ;;  %144 = vmatpush.msrb.mxu3 %v93_v20  ;;  %v260_v18 = vld [vmem:[%s566_s5 + $0x10] sm:$0xff] }
  0x21   :  { %247 = vmatpush.msrb.mxu0 %v225_v56  ;;  %284 = vmatpush.msrb.mxu1 %v264_v7 }
  0x22   :  { %121 = vmatpush.msrb.mxu2 %v94_v19  ;;  %145 = vmatpush.msrb.mxu3 %v92_v21  ;;  %v259_v19 = vld [vmem:[%s566_s5 + $0x8] sm:$0xff] }
  0x23   :  { %248 = vmatpush.msrb.mxu0 %v224_v57  ;;  %285 = vmatpush.msrb.mxu1 %v263_v9 }
  0x24   :  { %122 = vmatpush.msrb.mxu2 %v93_v20  ;;  %v258_v20 = vld [vmem:[%s566_s5] sm:$0xff] }
  0x25   :  { %249 = vmatpush.msrb.mxu0 %v223_v58  ;;  %286 = vmatpush.msrb.mxu1 %v262_v13 }
  0x26   :  { %123 = vmatpush.msrb.mxu2 %v92_v21  ;;  %v307_v21 = vld [vmem:[%s563_s8 + $0x2] ss:$0 sm:$0xff] }
  0x27   :  { %250 = vmatpush.msrb.mxu0 %v222_v59  ;;  %287 = vmatpush.msrb.mxu1 %v261_v15 }
  0x29   :  { %251 = vmatpush.msrb.mxu0 %v221_v60  ;;  %288 = vmatpush.msrb.mxu1 %v260_v18 }
  0x2b   :  { %252 = vmatpush.msrb.mxu0 %v220_v61  ;;  %289 = vmatpush.msrb.mxu1 %v259_v19 }
  0x2d   :  { %290 = vmatpush.msrb.mxu1 %v258_v20 }
  0x86   :  { %v63_v22 = vpop.f32.mrf.mxu3 }
  0x8a   :  { %v87_v24 = vpop.f32.mrf.mxu2 }
  0x8b   :  { %v88_v25 = vadd.f32 %v87_v24, %v63_v22 }
  0x8d   :  { %v434_v26 = vadd.f32 %v305_v23, %v88_v25  ;;  %v308_v25 = vld [vmem:[%s563_s8 + $0x3] ss:$0 sm:$0xff] }
  0x8f   :  { %124 = vmatmul.f32.vlgmr.msrb.gmra.mxu2 %v434_v26  ;;  %v129_v27 = vmul.f32 %v434_v26, %v434_v26 }
  0x91   :  { %146 = vmatmul.f32.vlgmr.msrb.gmra.mxu3 %v129_v27 }
 0x112   :  { %v125_v28 = vpop.f32.mrf.mxu2 }
 0x113   :  { %v128_v29 = vmul.f32 0.03125, %v125_v28 }
 0x114   :  { %v147_v30 = vpop.f32.mrf.mxu3 }
 0x115   :  { %v151_v31 = vmul.f32 %v128_v29, %v128_v29  ;;  %v150_v32 = vmul.f32 0.03125, %v147_v30 }
 0x117   :  { %v152_v33 = vsub.f32 %v150_v32, %v151_v31 }
 0x119   :  { %v153_v34 = vadd.f32 1e-05, %v152_v33 }
 0x11b   :  { %309 = vrsqrt.f32 %v153_v34  ;;  %vm160_vm3 = vweird.f32 %v153_v34 }
 0x121   :  { %v310_v35 = vpop.eup %309 }
 0x122   :  { %v155_v36 = vmul.f32 %v310_v35, %v153_v34  ;;  %vm161_vm2 = vweird.f32 %v310_v35 }
 0x123   :  { %vm162_vm4 = vmor %vm160_vm3, %vm161_vm2 }
 0x124   :  { %v156_v37 = vmul.f32 %v310_v35, %v155_v36 }
 0x126   :  { %v157_v38 = vmul.f32 0.5, %v156_v37 }
 0x128   :  { %v158_v39 = vsub.f32 1.5, %v157_v38 }
 0x12a   :  { %v159_v40 = vmul.f32 %v310_v35, %v158_v39 }
 0x12c   :  { %v163_v41 = vsel %vm162_vm4, %v310_v35, %v159_v40 }
 0x12d   :  { %165 = vrot.lane.b32.xlu0 %v163_v41, %s313_s6 }
 0x19f   :  { %v166_v53 = vpop.permute.xlu0 %165 }
 0x1a0   :  { %v169_v54 = vsel %vm168_vm5, %v128_v29, %v166_v53 }
 0x1a1   :  { %302 = vmatmul.msk.f32.vlgmr.msra.gmra.mxu0 %vm42_vm0, %v169_v54  ;;  %303 = vmatmul.msk.f32.vlgmr.msra.gmra.mxu1 %vm42_vm0, %v169_v54 }
 0x21e   :  { %v192_v8 = vpop.f32.mrf.mxu0  ;;  %v212_v12 = vpop.f32.mrf.mxu1 }
 0x21f   :  { %v215_v10 = vsub.f32 %v434_v26, %v192_v8 }
 0x221   :  { %v216_v14 = vmul.f32 %v215_v10, %v212_v12 }
 0x223   :  { %v218_v16 = vadd.f32 %v306_v11, %v216_v14 }
 0x225   :  { %311 = vtanh.f32 %v218_v16 }
 0x22b   :  { %v312_v17 = vpop.eup %311 }
 0x22c   :  { %253 = vmatmul.f32.vlgmr.msrb.gmra.mxu0 %v312_v17 }
 0x2a9   :  { %v254_v22 = vpop.f32.mrf.mxu0 }
 0x2aa   :  { %v255_v23 = vadd.f32 %v307_v21, %v254_v22 }
 0x2ac   :  { %v257_v24 = vmax.f32 %v255_v23, 0.0 }
 0x2ae   :  { %291 = vmatmul.f32.vlgmr.msrb.gmra.mxu1 %v257_v24 }
 0x32b   :  { %v292_v26 = vpop.f32.mrf.mxu1 }
 0x32c   :  { %v293_v27 = vadd.f32 %v308_v25, %v292_v26 }
 0x32e   :  { %295 = vst.msk [vmem:[%s567_s9] sm:$0xff] %vm168_vm5, %v293_v27 }

</bundles_post_ra>
